<compile_context>
chip_gen: v5e
topology: v5e:2x2
jax: 0.10.0
libtpu: 0.0.40
codegen_flags: <defaults>
</compile_context>

<pallas_src>
import functools

import jax
import jax.numpy as jnp
from jax.experimental import pallas as pl
from jax.experimental.pallas import tpu as pltpu


# ---------------------------------------------------------------------------
# helpers
# ---------------------------------------------------------------------------
def _round_up(x, m):
    return ((x + m - 1) // m) * m


def _single_buffered_spec(block_shape, index_map):
    """BlockSpec for a grid-invariant operand: single-buffered when supported."""
    try:
        return pl.BlockSpec(block_shape, index_map, pipeline_mode=pl.Buffered(1))
    except Exception:  # older jax without pipeline_mode / Buffered
        return pl.BlockSpec(block_shape, index_map)


def _pick_lane_tile(L, cap=512):
    """Lane (last-dim) tile: multiple of 128, or the full dim when L <= 128.

    Returns (TL, Lp): Lp >= L is the padded lane extent (a multiple of TL).
    Never falls back to an unbounded full-L block for large L.
    (cap=512 is chosen to fit v7x's 64 MiB VMEM; v5e/v6e could use 1024.)
    """
    if L <= 128:
        return L, L
    Lp = _round_up(L, 128)
    for t in range(cap, 0, -128):
        if Lp % t == 0:
            return t, Lp
    return 128, Lp


def _pick_k_tile(Cin, Cout, TL, itemsize, budget_bytes=8 * 1024 * 1024):
    """Contraction tile dividing K = 9*Cin: full K if it fits the budget, else 3*Cin, else Cin."""
    K = Cin * 9
    if Cin % 8 != 0:          # can't tile on sublane granularity; keep full contraction
        return K
    for mult in (9, 3, 1):
        tk = Cin * mult
        if (2 * tk * TL + 2 * Cout * tk) * itemsize <= budget_bytes:
            return tk
    return Cin


def _pick_row_tile(N, row_bytes, target_bytes=2 * 1024 * 1024):
    """Sublane (row) tile: ~target_bytes per block, multiple of 8, divisor of N preferred."""
    cap = max(8, (target_bytes // max(row_bytes, 1)) // 8 * 8)
    if N <= cap:
        return N
    for t in range(cap, 7, -8):
        if N % t == 0:
            return t
    return cap  # ragged last block; Pallas masks the out-of-bounds rows


# ---------------------------------------------------------------------------
# Conv path: 3x3, stride 2, pad 1
# ---------------------------------------------------------------------------
def _conv_matmul_kernel(p_ref, w_ref, b_ref, o_ref, acc_ref):
    # p_ref: (1, tk, TL)   w_ref: (1, Cout, tk)   b_ref: (Cout, 1)
    # o_ref: (1, Cout, TL) acc_ref: (Cout, TL) f32 scratch
    k = pl.program_id(2)

    @pl.when(k == 0)
    def _():
        acc_ref[...] = jnp.zeros_like(acc_ref)

    # Native-dtype MXU operands (bf16 stays bf16); f32 accumulation.
    acc_ref[...] += jnp.dot(w_ref[0], p_ref[0], preferred_element_type=jnp.float32)

    @pl.when(k == pl.num_programs(2) - 1)
    def _():
        o_ref[0] = (acc_ref[...] + b_ref[...].astype(jnp.float32)).astype(o_ref.dtype)


def downsample_conv2d(x, w, b, *, lane_tile_cap=512):
    """3x3, stride-2, pad-1 Conv2d.  x:(B,Cin,H,W)  w:(Cout,Cin,3,3)  b:(Cout,)."""
    B, Cin, H, W = x.shape
    Cout = w.shape[0]
    Ho = (H - 1) // 2 + 1
    Wo = (W - 1) // 2 + 1
    K = Cin * 9
    L = Ho * Wo
    itemsize = jnp.dtype(x.dtype).itemsize

    # im2col directly in the (B, K, Ho*Wo) layout the kernel consumes (no transposes).
    # TODO(synk): fuse this gather into the kernel to avoid materializing patches.
    xp = jnp.pad(x, ((0, 0), (0, 0), (1, 1), (1, 1)))
    taps = [xp[:, :, dy::2, dx::2][:, :, :Ho, :Wo]
            for dy in range(3) for dx in range(3)]            # 9 x (B, Cin, Ho, Wo)
    patches = jnp.stack(taps, axis=2).reshape(B, K, L)        # k = ci*9 + (dy*3+dx)

    TL, Lp = _pick_lane_tile(L, cap=lane_tile_cap)
    if Lp != L:
        patches = jnp.pad(patches, ((0, 0), (0, 0), (0, Lp - L)))

    tk = _pick_k_tile(Cin, Cout, TL, itemsize)
    nk = K // tk

    # Weight shaped (nk, Cout, tk) so the per-step block is (1, Cout, tk): the last two
    # block dims equal the full array dims -> layout-legal for any tk.
    w_flat = w.reshape(Cout, K)
    w3 = w_flat.reshape(Cout, nk, tk).transpose(1, 0, 2)
    b_col = b.reshape(Cout, 1)

    if nk == 1:  # weight block is grid-invariant -> single-buffer it
        w_spec = _single_buffered_spec((1, Cout, K), lambda bb, i, k: (0, 0, 0))
    else:
        w_spec = pl.BlockSpec((1, Cout, tk), lambda bb, i, k: (k, 0, 0))
    b_spec = _single_buffered_spec((Cout, 1), lambda bb, i, k: (0, 0))

    cost = pl.CostEstimate(
        flops=2 * B * Cout * K * Lp,
        transcendentals=0,
        bytes_accessed=(B * K * Lp + Cout * K + Cout + B * Cout * Lp) * itemsize)

    out3 = pl.pallas_call(
        _conv_matmul_kernel,
        out_shape=jax.ShapeDtypeStruct((B, Cout, Lp), x.dtype),
        grid=(B, Lp // TL, nk),
        in_specs=[
            pl.BlockSpec((1, tk, TL), lambda bb, i, k: (bb, k, i)),
            w_spec,
            b_spec,
        ],
        out_specs=pl.BlockSpec((1, Cout, TL), lambda bb, i, k: (bb, 0, i)),
        scratch_shapes=[pltpu.VMEM((Cout, TL), jnp.float32)],
        compiler_params=pltpu.CompilerParams(
            dimension_semantics=("parallel", "parallel", "arbitrary"),
            vmem_limit_bytes=48 * 1024 * 1024),
        cost_estimate=cost,
    )(patches, w3, b_col)

    return out3[:, :, :L].reshape(B, Cout, Ho, Wo)


# ---------------------------------------------------------------------------
# AvgPool path: kernel_size=2, stride=2
# ---------------------------------------------------------------------------
def _avgpool_kernel(x_ref, cm_ref, o_ref):
    # x_ref: (Rt, 2*W) — each row is [image row 2*ho | image row 2*ho+1]
    # cm_ref: (W, Wo)  — constant pooling matrix: 0.25 at (2q, q) and (2q+1, q)
    # o_ref: (Rt, Wo)
    Wd = cm_ref.shape[0]
    xv = x_ref[...]
    s = xv[:, :Wd] + xv[:, Wd:]                      # pair the two image rows (VPU)
    o_ref[...] = jnp.dot(s, cm_ref[...],             # 2->1 width compaction on the MXU
                         preferred_element_type=jnp.float32).astype(o_ref.dtype)


def downsample_avgpool2d(x):
    """AvgPool2d(kernel_size=2, stride=2).  x:(B,C,H,W), even H and W."""
    B, C, H, W = x.shape
    # TODO(synk): odd H/W (PyTorch floor-mode pooling) not handled.
    assert H % 2 == 0 and W % 2 == 0
    Ho, Wo = H // 2, W // 2
    N = B * C * Ho
    itemsize = jnp.dtype(x.dtype).itemsize

    # Free (contiguous) reshape: row r of x2 is [x[b,c,2*ho,:], x[b,c,2*ho+1,:]].
    x2 = x.reshape(N, 2 * W)
    # Constant column-pooling matrix: out[:, q] = 0.25*(s[:, 2q] + s[:, 2q+1]).
    cm = (jnp.repeat(jnp.eye(Wo, dtype=jnp.float32), 2, axis=0) * 0.25).astype(x.dtype)

    Rt = _pick_row_tile(N, 2 * W * itemsize)
    grid_r = pl.cdiv(N, Rt)

    cost = pl.CostEstimate(
        flops=N * W + 2 * N * W * Wo,
        transcendentals=0,
        bytes_accessed=(N * 2 * W + W * Wo + N * Wo) * itemsize)

    out2 = pl.pallas_call(
        _avgpool_kernel,
        out_shape=jax.ShapeDtypeStruct((N, Wo), x.dtype),
        grid=(grid_r,),
        in_specs=[
            pl.BlockSpec((Rt, 2 * W), lambda i: (i, 0)),
            _single_buffered_spec((W, Wo), lambda i: (0, 0)),
        ],
        out_specs=pl.BlockSpec((Rt, Wo), lambda i: (i, 0)),
        compiler_params=pltpu.CompilerParams(
            dimension_semantics=("parallel",),
            vmem_limit_bytes=48 * 1024 * 1024),
        cost_estimate=cost,
    )(x2, cm)

    return out2.reshape(B, C, Ho, Wo)


# ---------------------------------------------------------------------------
# Forward pass (mirrors Downsample.forward)
# ---------------------------------------------------------------------------
def downsample(x, params, *, channels, use_conv, dims=2, out_channels=None):
    out_channels = out_channels or channels
    assert x.shape[1] == channels
    if dims != 2:
        # TODO(synk): dims=1 and dims=3 (stride (1,2,2)) variants not implemented.
        raise NotImplementedError("Only dims=2 Downsample is implemented in Pallas.")
    if use_conv:
        return downsample_conv2d(x, params["op_w"], params["op_b"])
    assert channels == out_channels
    return downsample_avgpool2d(x)


# ---------------------------------------------------------------------------
if __name__ == "__main__":
    key = jax.random.PRNGKey(0)
    B, C, H, W = 2, 8, 16, 16
    COUT = 16

    k_x, k_w, k_b = jax.random.split(key, 3)
    x = jax.random.normal(k_x, (B, C, H, W), jnp.float32)
    params = {
        "op_w": jax.random.normal(k_w, (COUT, C, 3, 3), jnp.float32) * 0.05,
        "op_b": jax.random.normal(k_b, (COUT,), jnp.float32) * 0.05,
    }

    conv_fwd = jax.jit(functools.partial(
        downsample, channels=C, use_conv=True, dims=2, out_channels=COUT))
    pool_fwd = jax.jit(functools.partial(
        downsample, channels=C, use_conv=False, dims=2))

    y_conv = conv_fwd(x, params)
    y_pool = pool_fwd(x, params)
    jax.block_until_ready((y_conv, y_pool))

    assert y_conv.shape == (B, COUT, H // 2, W // 2)
    assert y_pool.shape == (B, C, H // 2, W // 2)

    # Reference checks (XLA).
    ref_conv = jax.lax.conv_general_dilated(
        x, params["op_w"], window_strides=(2, 2), padding=((1, 1), (1, 1)),
        dimension_numbers=("NCHW", "OIHW", "NCHW"),
        precision=jax.lax.Precision.HIGHEST) + params["op_b"][None, :, None, None]
    ref_pool = jnp.mean(x.reshape(B, C, H // 2, 2, W // 2, 2), axis=(3, 5))

    assert jnp.allclose(y_conv, ref_conv, atol=5e-3, rtol=5e-3), \
        float(jnp.max(jnp.abs(y_conv - ref_conv)))
    assert jnp.allclose(y_pool, ref_pool, atol=1e-5, rtol=1e-5), \
        float(jnp.max(jnp.abs(y_pool - ref_pool)))

    print("KERNEL_OK")
</pallas_src>

<mosaic_0001>
module attributes {stable_mosaic.version = 11 : i64} {
  func.func @_conv_matmul_kernel(%arg0: i32, %arg1: i32, %arg2: i32, %arg3: memref<1x72x64xf32, #tpu.memory_space<vmem>>, %arg4: memref<1x16x72xf32, #tpu.memory_space<vmem>>, %arg5: memref<16x1xf32, #tpu.memory_space<vmem>>, %arg6: memref<1x16x64xf32, #tpu.memory_space<vmem>>, %arg7: memref<16x64xf32, #tpu.memory_space<vmem>>) attributes {dimension_semantics = [#tpu.dimension_semantics<parallel>, #tpu.dimension_semantics<parallel>, #tpu.dimension_semantics<arbitrary>], iteration_bounds = array<i64: 2, 1, 1>, scalar_prefetch = 0 : i64, scratch_operands = 1 : i64, tpu.core_type = #tpu.core_type<tc>, window_params = [{transform_indices = @transform_0, window_bounds = array<i64: 1, 72, 64>}, {pipeline_mode = #tpu.pipeline_mode<synchronous>, transform_indices = @transform_1, window_bounds = array<i64: 1, 16, 72>}, {pipeline_mode = #tpu.pipeline_mode<synchronous>, transform_indices = @transform_2, window_bounds = array<i64: 16, 1>}, {transform_indices = @transform_3, window_bounds = array<i64: 1, 16, 64>}]} {
    %c0_i32 = arith.constant 0 : i32
    %0 = arith.cmpi eq, %arg2, %c0_i32 : i32
    %1 = arith.extui %0 : i1 to i32
    %c0_i32_0 = arith.constant 0 : i32
    %2 = arith.cmpi ne, %1, %c0_i32_0 : i32
    scf.if %2 {
      %cst_12 = arith.constant 0.000000e+00 : f32
      %14 = vector.broadcast %cst_12 : f32 to vector<16x64xf32>
      %c0_13 = arith.constant 0 : index
      %c0_14 = arith.constant 0 : index
      %15 = vector.load %arg7[%c0_13, %c0_14] : memref<16x64xf32, #tpu.memory_space<vmem>>, vector<16x64xf32>
      tpu.vector_store %arg7[%c0_13, %c0_14], %14 {strides = array<i32>} : memref<16x64xf32, #tpu.memory_space<vmem>>, vector<16x64xf32>,
    } else {
    }
    %c0 = arith.constant 0 : index
    %c0_1 = arith.constant 0 : index
    %3 = vector.load %arg7[%c0, %c0_1] : memref<16x64xf32, #tpu.memory_space<vmem>>, vector<16x64xf32>
    %c0_2 = arith.constant 0 : index
    %c0_3 = arith.constant 0 : index
    %c0_4 = arith.constant 0 : index
    %4 = vector.load %arg4[%c0_2, %c0_3, %c0_4] : memref<1x16x72xf32, #tpu.memory_space<vmem>>, vector<1x16x72xf32>
    %5 = vector.shape_cast %4 : vector<1x16x72xf32> to vector<16x72xf32>
    %c0_5 = arith.constant 0 : index
    %c0_6 = arith.constant 0 : index
    %c0_7 = arith.constant 0 : index
    %6 = vector.load %arg3[%c0_5, %c0_6, %c0_7] : memref<1x72x64xf32, #tpu.memory_space<vmem>>, vector<1x72x64xf32>
    %7 = vector.shape_cast %6 : vector<1x72x64xf32> to vector<72x64xf32>
    %cst = arith.constant dense<0.000000e+00> : vector<16x64xf32>
    %8 = tpu.matmul %5, %7, %cst {dimension_numbers = #tpu.dot_dimension_numbers<[1], [0], [0], [1], [0, 0, 1, 1], [], []>} : vector<16x72xf32>, vector<72x64xf32>, vector<16x64xf32> -> vector<16x64xf32>
    %9 = arith.addf %3, %8 : vector<16x64xf32>
    %c0_8 = arith.constant 0 : index
    %c0_9 = arith.constant 0 : index
    %10 = vector.load %arg7[%c0_8, %c0_9] : memref<16x64xf32, #tpu.memory_space<vmem>>, vector<16x64xf32>
    tpu.vector_store %arg7[%c0_8, %c0_9], %9 {strides = array<i32>} : memref<16x64xf32, #tpu.memory_space<vmem>>, vector<16x64xf32>,
    %c0_i32_10 = arith.constant 0 : i32
    %11 = arith.cmpi eq, %arg2, %c0_i32_10 : i32
    %12 = arith.extui %11 : i1 to i32
    %c0_i32_11 = arith.constant 0 : i32
    %13 = arith.cmpi ne, %12, %c0_i32_11 : i32
    scf.if %13 {
      %c0_12 = arith.constant 0 : index
      %c0_13 = arith.constant 0 : index
      %14 = vector.load %arg7[%c0_12, %c0_13] : memref<16x64xf32, #tpu.memory_space<vmem>>, vector<16x64xf32>
      %c0_14 = arith.constant 0 : index
      %c0_15 = arith.constant 0 : index
      %15 = vector.load %arg5[%c0_14, %c0_15] : memref<16x1xf32, #tpu.memory_space<vmem>>, vector<16x1xf32>
      %16 = vector.broadcast %15 : vector<16x1xf32> to vector<16x64xf32>
      %17 = arith.addf %14, %16 : vector<16x64xf32>
      %c0_16 = arith.constant 0 : index
      %c0_17 = arith.constant 0 : index
      %c0_18 = arith.constant 0 : index
      %18 = vector.load %arg6[%c0_16, %c0_17, %c0_18] : memref<1x16x64xf32, #tpu.memory_space<vmem>>, vector<1x16x64xf32>
      %19 = vector.shape_cast %18 : vector<1x16x64xf32> to vector<16x64xf32>
      %20 = vector.shape_cast %17 : vector<16x64xf32> to vector<1x16x64xf32>
      tpu.vector_store %arg6[%c0_16, %c0_17, %c0_18], %20 {strides = array<i32>} : memref<1x16x64xf32, #tpu.memory_space<vmem>>, vector<1x16x64xf32>,
    } else {
    }
    return
  }
  func.func @transform_0(%arg0: i32, %arg1: i32, %arg2: i32) -> (i32, i32, i32) {
    %c0_i32 = arith.constant 0 : i32
    return %arg0, %arg2, %arg1 : i32, i32, i32
  }
  func.func @transform_1(%arg0: i32, %arg1: i32, %arg2: i32) -> (i32, i32, i32) {
    %c0_i32 = arith.constant 0 : i32
    %c0_i32_0 = arith.constant 0 : i32
    %c0_i32_1 = arith.constant 0 : i32
    %c0_i32_2 = arith.constant 0 : i32
    return %c0_i32, %c0_i32_0, %c0_i32_1 : i32, i32, i32
  }
  func.func @transform_2(%arg0: i32, %arg1: i32, %arg2: i32) -> (i32, i32) {
    %c0_i32 = arith.constant 0 : i32
    %c0_i32_0 = arith.constant 0 : i32
    %c0_i32_1 = arith.constant 0 : i32
    return %c0_i32, %c0_i32_0 : i32, i32
  }
  func.func @transform_3(%arg0: i32, %arg1: i32, %arg2: i32) -> (i32, i32, i32) {
    %c0_i32 = arith.constant 0 : i32
    %c0_i32_0 = arith.constant 0 : i32
    return %arg0, %c0_i32, %arg1 : i32, i32, i32
  }
}

</mosaic_0001>

<bundles_post_ra>
// kernel: downsample.1
= control target key start
LH: loop header
LB: loop body
LE: loop exit
PB: predicated region body
PF: predicated region fallthrough
CT: control target
= control target key end

     0   :  { %s486_s12 = smov 0   ;;  %s488_s13 = smov 0   ;;  %s541_s0 = inlined_call_operand.vmem [shape: f32[2,72,64], index: 0, kind: input, shape index: {}]   ;;  %s542_s1 = inlined_call_operand.vmem [shape: f32[1,16,72], index: 1, kind: input, shape index: {}]   ;;  %s543_s2 = inlined_call_operand.vmem [shape: f32[16,1], index: 2, kind: input, shape index: {}]   ;;  %s544_s3 = inlined_call_operand.vmem [shape: f32[2,16,64], index: 3, kind: output, shape index: {}]  }
   0x1   :  { %s490_s14 = smov 0  }
   0x2 LB: > { %s32_s15 = sadd.s32 1, %s458_s13  ;;  %p394_p0 = scmp.ge.s32.totalorder %s462_s14, 1  ;;  %s462_s14 = sphi %s490_s14, %s13_s14   ;;  %s458_s13 = sphi %s488_s13, %s546_s13   ;;  %s454_s12 = sphi %s486_s12, %s545_s12  }
   0x3   : > { %p34_p1 = scmp.ge.s32.totalorder %s32_s15, 2  ;;  %p170_p2 = scmp.lt.s32.totalorder %s462_s14, 3 }
   0x5   : > { %s548_s15 = smov (%p34_p1, %s32_s15), 0  ;;  %p171_p3 = pnand %p394_p0, %p170_p2 }
   0x6   : > { %p205_p4 = scmp.lt.s32.totalorder (!%p171_p3), %s454_s12, 1 }
   0x7   : > { %174 = sbr.rel (%p171_p3) target bundleno = 174 (0xae), region = 32 }
   0xc   : > { %v285_v0 = vld [vmem:[%s543_s2] sm:$0xff]  ;;  %v464_v1 = vmov 0   ;;  %s550_s12 = smov (!%p205_p4, %s454_s12), 1  ;;  %v286_v4 = vld [vmem:[%s543_s2 + $0x8] sm:$0xff]  ;;  %vm245_vm0 = vcmask 588800   ;;  %vm229_vm1 = vcmask 523264  }
   0xd   : > { %439 = vset.pattern.permute.xlu0 %v464_v1  ;;  %s412_s18 = smul.u32 72, %s550_s12  ;;  %v234_v12 = vld [vmem:[%s542_s1] sm:$0xff]  ;;  %v235_v13 = vld [vmem:[%s542_s1 + $0x8] sm:$0xff]  ;;  %v465_v14 = vmov 0.0   ;;  %s402_s28 = sshll.u32 %s550_s12, 4 }
   0xe   : > { %289 = vperm.xlu0 %439, %v285_v0   ;;  %230 = vst.msk [vmem:[#allocation2] sm:$0xff] %vm229_vm1, %v465_v14  ;;  %s224_s4 = scalar_lea.vmem %s544_s3, %s402_s28 }
   0xf   : > { %s215_s21 = scalar_lea.vmem %s541_s0, %s412_s18  ;;  %231 = vst.msk [vmem:[#allocation2 + $0x8] sm:$0xff] %vm229_vm1, %v465_v14 }
  0x10   : > { %v244_v2 = vld [vmem:[%s215_s21 + $0x40] sm:$0xff]  ;;  %v243_v3 = vld [vmem:[%s215_s21 + $0x38] sm:$0xff]  ;;  %v242_v5 = vld [vmem:[%s215_s21 + $0x30] sm:$0xff] }
  0x11   : > { %259 = vmatpush.msra.mxu0 %v244_v2  ;;  %403 = vmatpush.msra.mxu1 %v244_v2  ;;  %v241_v6 = vld [vmem:[%s215_s21 + $0x28] sm:$0xff]  ;;  %v240_v7 = vld [vmem:[%s215_s21 + $0x20] sm:$0xff]  ;;  %v239_v8 = vld [vmem:[%s215_s21 + $0x18] sm:$0xff] }
  0x12   : > { %v238_v9 = vld [vmem:[%s215_s21 + $0x10] sm:$0xff]  ;;  %v237_v10 = vld [vmem:[%s215_s21 + $0x8] sm:$0xff]  ;;  %v236_v11 = vld [vmem:[%s215_s21] sm:$0xff] }
  0x13   : > { %260 = vmatpush.msra.mxu0 %v243_v3  ;;  %404 = vmatpush.msra.mxu1 %v243_v3 }
  0x15   : > { %261 = vmatpush.msra.mxu0 %v242_v5  ;;  %405 = vmatpush.msra.mxu1 %v242_v5  ;;  %v232_v15 = vld [vmem:[#allocation2] sm:$0xff] }
  0x16   : > { %294 = vperm.xlu0 %439, %v286_v4   ;;  %v233_v16 = vld [vmem:[#allocation2 + $0x8] sm:$0xff] }
  0x17   : > { %262 = vmatpush.msra.mxu0 %v241_v6  ;;  %406 = vmatpush.msra.mxu1 %v241_v6 }
  0x19   : > { %263 = vmatpush.msra.mxu0 %v240_v7  ;;  %407 = vmatpush.msra.mxu1 %v240_v7 }
  0x1b   : > { %264 = vmatpush.msra.mxu0 %v239_v8  ;;  %408 = vmatpush.msra.mxu1 %v239_v8 }
  0x1d   : > { %265 = vmatpush.msra.mxu0 %v238_v9  ;;  %409 = vmatpush.msra.mxu1 %v238_v9 }
  0x1f   : > { %266 = vmatpush.msra.mxu0 %v237_v10  ;;  %410 = vmatpush.msra.mxu1 %v237_v10 }
  0x21   : > { %267 = vmatpush.msra.mxu0 %v236_v11  ;;  %411 = vmatpush.msra.mxu1 %v236_v11 }
  0x22   : > { %398 = vmatmul.msk.f32.vlgmr.msra.gmra.mxu0 %vm245_vm0, %v234_v12  ;;  %399 = vmatmul.msk.f32.vlgmr.msra.gmra.mxu1 %vm245_vm0, %v235_v13 }
  0x80   : > { %v290_v19 = vpop.permute.xlu0 %289 }
  0x88   : > { %v295_v23 = vpop.permute.xlu0 %294 }
  0x9f   : > { %v269_v17 = vpop.f32.mrf.mxu0  ;;  %v272_v18 = vpop.f32.mrf.mxu1 }
  0xa0   : > { %v275_v20 = vadd.f32 %v269_v17, %v232_v15  ;;  %v276_v21 = vadd.f32 %v272_v18, %v233_v16 }
  0xa2   : > { %278 = vst.msk [vmem:[#allocation2] sm:$0xff] %vm229_vm1, %v275_v20 }
  0xa3   : > { %279 = vst.msk [vmem:[#allocation2 + $0x8] sm:$0xff] %vm229_vm1, %v276_v21 }
  0xa9   : > { %v283_v22 = vld [vmem:[#allocation2] sm:$0xff] }
  0xaa   : > { %v284_v24 = vld [vmem:[#allocation2 + $0x8] sm:$0xff]  ;;  %v297_v25 = vadd.f32 %v290_v19, %v283_v22 }
  0xab   : > { %v298_v26 = vadd.f32 %v295_v23, %v284_v24 }
  0xac   : > { %299 = vst.msk [vmem:[%s224_s4] sm:$0xff] %vm229_vm1, %v297_v25 }
  0xad   : > { %300 = vst.msk [vmem:[%s224_s4 + $0x8] sm:$0xff] %vm229_vm1, %v298_v26 }
  0xae PF: > { %s13_s14 = sadd.s32 1, %s462_s14   ;;  %s545_s12 = smov %s458_s13 }
  0xaf   : > { %p10_p5 = scmp.ge.s32.totalorder %s13_s14, 4   ;;  %s546_s13 = smov %s548_s15 }
  0xb1   :  { %12 = sbr.rel (!%p10_p5) target bundleno = 2 (0x2), region = 70 }

</bundles_post_ra>
